<compile_context>
chip_gen: v5e
topology: v5e:2x2
jax: 0.10.0
libtpu: 0.0.40
codegen_flags: <defaults>
</compile_context>

<pallas_src>
import numpy as np
import jax
import jax.numpy as jnp
from jax.experimental import pallas as pl
from jax.experimental.pallas import tpu as pltpu


def _round_up(x, m):
    return ((x + m - 1) // m) * m


def _make_avg_kernel(den_col, approx_recip):
    def _avg_kernel(g_ref, h_ref, out_ref):
        """Weighted average for one tile of idx_prime rows.

        g_ref : [TM, NPc]  ReLU-masked, pre-cast rows of g (only idx_prime targets)
        h_ref : [NPc, CP]  h features in columns [0, C); 1.0 in column `den_col`
                           for rows < N, so the denominator rides the same matmul.
        """
        num = jnp.dot(g_ref[...], h_ref[...],
                      preferred_element_type=jnp.float32)        # MXU [TM, CP]
        den = num[:, den_col:den_col + 1]                        # [TM, 1]
        avg = num * pl.reciprocal(den, approx=approx_recip)      # EUP + VPU
        # den == 0 (no positive g entries in the row) must reproduce torch's 0/0 -> nan,
        # without relying on the approximate reciprocal returning inf for 1/0.
        out_ref[...] = jnp.where(den > 0.0, avg, jnp.nan).astype(out_ref.dtype)

    return _avg_kernel


def unpool(g, h, pre_h, idx, *, tile_m=256, in_dtype=jnp.bfloat16):
    """Pallas equivalent of Unpool().forward(g, h, pre_h, idx) -> (g, new_h)."""
    del pre_h  # unused by the reference module
    g = jnp.asarray(g, jnp.float32)
    h = jnp.asarray(h, jnp.float32)
    N = g.shape[0]
    M, C = h.shape

    idx_list = [int(v) for v in np.asarray(idx).reshape(-1).tolist()]

    # --- host-side index bookkeeping (data dependent / dynamic-size -> plain python) ---
    # src[r]      = position p in h scattered into new_h[r]  (last write wins, like torch)
    # prime_rows  = target rows of the idx_prime weighted-average loop (deduplicated)
    src = -np.ones((N,), np.int32)
    for p, v in enumerate(idx_list):
        src[v if v >= 0 else N + v] = p
    in_range = set(range(N))
    prime_rows, seen = [], set()
    for v in idx_list:
        if v not in in_range:                      # literal reference rule (negatives)
            r = v if v >= 0 else N + v
            if r not in seen:
                seen.add(r)
                prime_rows.append(r)
    Kp = len(prime_rows)

    # --- `new_h[idx] = h` as a plain XLA row gather (rows never written stay zero) ---
    src_j = jnp.asarray(src)
    new_h = jnp.where(
        (src_j >= 0)[:, None],
        jnp.take(h, jnp.clip(src_j, 0, M - 1), axis=0),
        jnp.zeros((N, C), jnp.float32),
    )

    if Kp == 0:
        # nothing to interpolate -> no kernel launch at all
        return g, new_h

    # --- compacted weighted-average kernel: only the Kp idx_prime rows ---------------
    # TODO(synk): if M < N and an idx_prime row has g[i, j] > 0 for some j >= M, the
    # PyTorch code raises IndexError; here those missing h rows contribute zero to the
    # numerator (the denominator still matches the reference exactly).  If M > N, h rows
    # >= N are ignored (g only has N columns), as in the reference.
    f32_mode = jnp.dtype(in_dtype) == jnp.dtype(jnp.float32)
    itemsize = jnp.dtype(in_dtype).itemsize
    row_mult = 8 if f32_mode else 16                 # bf16 packs 16 sublanes per vreg
    tile_m = max(row_mult, min(tile_m, _round_up(Kp, row_mult)))
    Kp_pad = _round_up(Kp, tile_m)
    NPc = _round_up(N, 128)                          # contraction = g's column count only
    CP = _round_up(C + 1, 128)                       # lane-dense features + one den lane

    rows_j = jnp.asarray(np.asarray(prime_rows, np.int32))
    # gather + relu + cast in the wrapper: the kernel sees pre-masked rows
    g_rows = jnp.maximum(jnp.take(g, rows_j, axis=0), 0.0).astype(in_dtype)
    g_pad = jnp.zeros((Kp_pad, NPc), in_dtype).at[:Kp, :N].set(g_rows)

    Mh = min(M, NPc)
    h_pad = jnp.zeros((NPc, CP), in_dtype).at[:Mh, :C].set(h[:Mh].astype(in_dtype))
    h_pad = h_pad.at[:N, C].set(1.0)                 # ones lane -> denominator via MXU

    grid = (Kp_pad // tile_m,)

    # VMEM budget: double-buffered g tile + single-buffered resident h + f32 out tiles.
    vmem_needed = (2 * tile_m * NPc * itemsize
                   + 2 * NPc * CP * itemsize          # worst case (fallback double-buffers h)
                   + 2 * tile_m * CP * 4)
    try:
        vmem_cap = int(pltpu.get_tpu_info().vmem_capacity_bytes)
    except Exception:
        vmem_cap = 64 * 1024 * 1024
    # generation-aware: leave ~1/8 headroom for compiler scratch, never cap below need.
    vmem_limit = int(min(max(vmem_needed + (8 << 20), 32 << 20), (vmem_cap * 7) // 8))
    vmem_limit = max(vmem_limit, vmem_needed + (2 << 20))

    kernel = _make_avg_kernel(den_col=C, approx_recip=not f32_mode)

    def _call(h_pipeline_mode):
        h_kwargs = {} if h_pipeline_mode is None else {"pipeline_mode": h_pipeline_mode}
        return pl.pallas_call(
            kernel,
            out_shape=jax.ShapeDtypeStruct((Kp_pad, CP), jnp.float32),
            grid_spec=pltpu.PrefetchScalarGridSpec(
                num_scalar_prefetch=0,
                grid=grid,
                in_specs=[
                    pl.BlockSpec((tile_m, NPc), lambda i: (i, 0)),          # g row tile
                    pl.BlockSpec((NPc, CP), lambda i: (0, 0), **h_kwargs),  # resident h
                ],
                out_specs=pl.BlockSpec((tile_m, CP), lambda i: (i, 0)),
            ),
            compiler_params=pltpu.CompilerParams(
                dimension_semantics=("parallel",),   # row tiles shard across TCs on v7x
                vmem_limit_bytes=vmem_limit,
            ),
            cost_estimate=pl.CostEstimate(
                flops=int(2 * Kp_pad * NPc * CP),
                transcendentals=0,
                bytes_accessed=int(Kp_pad * NPc * itemsize
                                   + NPc * CP * itemsize
                                   + Kp_pad * CP * 4),
            ),
        )(g_pad, h_pad)

    try:
        # constant index map -> h is fetched once; single-buffer it to halve its VMEM.
        avg = _call(pl.Buffered(1))
    except Exception:
        # pipeline_mode / Buffered(1) unsupported on this jax version -> default buffering
        avg = _call(None)

    # scatter the averaged rows back over the `new_h[idx] = h` result (overwrites, like
    # the reference's idx_prime loop).
    new_h = new_h.at[rows_j].set(avg[:Kp, :C])
    return g, new_h


def _ref_unpool_numpy(g, h, idx):
    """Literal numpy transcription of the PyTorch forward (for verification)."""
    g = np.asarray(g, np.float64)
    h = np.asarray(h, np.float64)
    N = g.shape[0]
    new_h = np.zeros((N, h.shape[1]), np.float64)
    new_h[np.asarray(idx)] = h
    b = set(range(N))
    idx_prime = [int(v) for v in np.asarray(idx).reshape(-1).tolist() if int(v) not in b]
    for i in idx_prime:
        tmp1 = np.zeros(h.shape[1])
        tmp2 = 0.0
        for j in range(N):
            if g[i, j] > 0:
                tmp1 += h[j] * g[i, j]
                tmp2 += g[i, j]
        new_h[i] = tmp1 / tmp2
    return new_h


if __name__ == "__main__":
    key = jax.random.PRNGKey(0)
    kg, kh, kp = jax.random.split(key, 3)
    N, C = 16, 32
    g = jax.random.normal(kg, (N, N), jnp.float32)
    h = jax.random.normal(kh, (N, C), jnp.float32)
    pre_h = jax.random.normal(kp, (N, C), jnp.float32)   # unused, per the module
    # idx covers every output row; the "-3" entry (row 13) is the only value not in
    # range(N), so it exercises the idx_prime weighted-average branch.
    idx = np.array(list(range(13)) + [-3, 14, 15], dtype=np.int64)

    ref = _ref_unpool_numpy(np.asarray(g), np.asarray(h), idx)

    # Strict check with f32 MXU inputs (exact reciprocal in this mode; den now rides the
    # MXU ones-column, hence the slightly loosened tolerance).
    g_out, new_h32 = unpool(g, h, pre_h, idx, in_dtype=jnp.float32)
    jax.block_until_ready(new_h32)
    np.testing.assert_allclose(np.asarray(new_h32), ref, rtol=2e-4, atol=2e-5)
    np.testing.assert_allclose(np.asarray(g_out), np.asarray(g), rtol=0, atol=0)

    # Default bf16 fast path: only the idx_prime (weighted-average) rows see bf16
    # rounding, so a looser tolerance applies there.
    _, new_hbf = unpool(g, h, pre_h, idx)
    jax.block_until_ready(new_hbf)
    np.testing.assert_allclose(np.asarray(new_hbf), ref, rtol=5e-2, atol=5e-2)

    # idx entirely in range(N): idx_prime is empty -> the pallas_call is skipped.
    idx_all = np.arange(N, dtype=np.int64)
    _, new_h_noprime = unpool(g, h, pre_h, idx_all)
    jax.block_until_ready(new_h_noprime)
    np.testing.assert_allclose(np.asarray(new_h_noprime), np.asarray(h), rtol=1e-6, atol=1e-6)

    print("KERNEL_OK")
</pallas_src>

<mosaic_0001>
module attributes {stable_mosaic.version = 11 : i64} {
  func.func @_avg_kernel(%arg0: i32, %arg1: memref<8x128xf32, #tpu.memory_space<vmem>>, %arg2: memref<128x128xf32, #tpu.memory_space<vmem>>, %arg3: memref<8x128xf32, #tpu.memory_space<vmem>>) attributes {dimension_semantics = [#tpu.dimension_semantics<parallel>], iteration_bounds = array<i64: 1>, scalar_prefetch = 0 : i64, scratch_operands = 0 : i64, tpu.core_type = #tpu.core_type<tc>, window_params = [{transform_indices = @transform_0, window_bounds = array<i64: 8, 128>}, {pipeline_mode = #tpu.pipeline_mode<synchronous>, transform_indices = @transform_1, window_bounds = array<i64: 128, 128>}, {transform_indices = @transform_2, window_bounds = array<i64: 8, 128>}]} {
    %c0 = arith.constant 0 : index
    %c0_0 = arith.constant 0 : index
    %0 = vector.load %arg1[%c0, %c0_0] : memref<8x128xf32, #tpu.memory_space<vmem>>, vector<8x128xf32>
    %c0_1 = arith.constant 0 : index
    %c0_2 = arith.constant 0 : index
    %1 = vector.load %arg2[%c0_1, %c0_2] : memref<128x128xf32, #tpu.memory_space<vmem>>, vector<128x128xf32>
    %cst = arith.constant dense<0.000000e+00> : vector<8x128xf32>
    %2 = tpu.matmul %0, %1, %cst {dimension_numbers = #tpu.dot_dimension_numbers<[1], [0], [0], [1], [0, 0, 1, 1], [], []>} : vector<8x128xf32>, vector<128x128xf32>, vector<8x128xf32> -> vector<8x128xf32>
    %3 = vector.extract_strided_slice %2 {offsets = [0, 32], sizes = [8, 1], strides = [1, 1]} : vector<8x128xf32> to vector<8x1xf32>
    %4 = tpu.reciprocal %3 : vector<8x1xf32> -> vector<8x1xf32>
    %5 = vector.broadcast %4 : vector<8x1xf32> to vector<8x128xf32>
    %6 = arith.mulf %2, %5 : vector<8x128xf32>
    %cst_3 = arith.constant 0.000000e+00 : f32
    %7 = vector.broadcast %cst_3 : f32 to vector<8x1xf32>
    %8 = arith.cmpf ogt, %3, %7 : vector<8x1xf32>
    %cst_4 = arith.constant 0x7FC00000 : f32
    %9 = vector.shape_cast %8 : vector<8x1xi1> to vector<8x1xi1>
    %10 = vector.broadcast %9 : vector<8x1xi1> to vector<8x128xi1>
    %11 = vector.broadcast %cst_4 : f32 to vector<8x128xf32>
    %12 = arith.select %10, %6, %11 : vector<8x128xi1>, vector<8x128xf32>
    %c0_5 = arith.constant 0 : index
    %c0_6 = arith.constant 0 : index
    %13 = vector.load %arg3[%c0_5, %c0_6] : memref<8x128xf32, #tpu.memory_space<vmem>>, vector<8x128xf32>
    tpu.vector_store %arg3[%c0_5, %c0_6], %12 {strides = array<i32>} : memref<8x128xf32, #tpu.memory_space<vmem>>, vector<8x128xf32>,
    return
  }
  func.func @transform_0(%arg0: i32) -> (i32, i32) {
    %c0_i32 = arith.constant 0 : i32
    %c0_i32_0 = arith.constant 0 : i32
    return %arg0, %c0_i32 : i32, i32
  }
  func.func @transform_1(%arg0: i32) -> (i32, i32) {
    %c0_i32 = arith.constant 0 : i32
    %c0_i32_0 = arith.constant 0 : i32
    %c0_i32_1 = arith.constant 0 : i32
    return %c0_i32, %c0_i32_0 : i32, i32
  }
  func.func @transform_2(%arg0: i32) -> (i32, i32) {
    %c0_i32 = arith.constant 0 : i32
    %c0_i32_0 = arith.constant 0 : i32
    return %arg0, %c0_i32 : i32, i32
  }
}

module attributes {stable_mosaic.version = 11 : i64} {
  func.func @_avg_kernel(%arg0: i32, %arg1: memref<8x128xf32, #tpu.memory_space<vmem>>, %arg2: memref<128x128xf32, #tpu.memory_space<vmem>>, %arg3: memref<8x128xf32, #tpu.memory_space<vmem>>) attributes {dimension_semantics = [#tpu.dimension_semantics<parallel>], iteration_bounds = array<i64: 1>, scalar_prefetch = 0 : i64, scratch_operands = 0 : i64, tpu.core_type = #tpu.core_type<tc>, window_params = [{transform_indices = @transform_0, window_bounds = array<i64: 8, 128>}, {pipeline_mode = #tpu.pipeline_mode<synchronous>, transform_indices = @transform_1, window_bounds = array<i64: 128, 128>}, {transform_indices = @transform_2, window_bounds = array<i64: 8, 128>}]} {
    %c0 = arith.constant 0 : index
    %c0_0 = arith.constant 0 : index
    %0 = vector.load %arg1[%c0, %c0_0] : memref<8x128xf32, #tpu.memory_space<vmem>>, vector<8x128xf32>
    %c0_1 = arith.constant 0 : index
    %c0_2 = arith.constant 0 : index
    %1 = vector.load %arg2[%c0_1, %c0_2] : memref<128x128xf32, #tpu.memory_space<vmem>>, vector<128x128xf32>
    %cst = arith.constant dense<0.000000e+00> : vector<8x128xf32>
    %2 = tpu.matmul %0, %1, %cst {dimension_numbers = #tpu.dot_dimension_numbers<[1], [0], [0], [1], [0, 0, 1, 1], [], []>} : vector<8x128xf32>, vector<128x128xf32>, vector<8x128xf32> -> vector<8x128xf32>
    %3 = vector.extract_strided_slice %2 {offsets = [0, 32], sizes = [8, 1], strides = [1, 1]} : vector<8x128xf32> to vector<8x1xf32>
    %4 = tpu.reciprocal %3 : vector<8x1xf32> -> vector<8x1xf32>
    %5 = vector.broadcast %4 : vector<8x1xf32> to vector<8x128xf32>
    %6 = arith.mulf %2, %5 : vector<8x128xf32>
    %cst_3 = arith.constant 0.000000e+00 : f32
    %7 = vector.broadcast %cst_3 : f32 to vector<8x1xf32>
    %8 = arith.cmpf ogt, %3, %7 : vector<8x1xf32>
    %cst_4 = arith.constant 0x7FC00000 : f32
    %9 = vector.shape_cast %8 : vector<8x1xi1> to vector<8x1xi1>
    %10 = vector.broadcast %9 : vector<8x1xi1> to vector<8x128xi1>
    %11 = vector.broadcast %cst_4 : f32 to vector<8x128xf32>
    %12 = arith.select %10, %6, %11 : vector<8x128xi1>, vector<8x128xf32>
    %c0_5 = arith.constant 0 : index
    %c0_6 = arith.constant 0 : index
    %13 = vector.load %arg3[%c0_5, %c0_6] : memref<8x128xf32, #tpu.memory_space<vmem>>, vector<8x128xf32>
    tpu.vector_store %arg3[%c0_5, %c0_6], %12 {strides = array<i32>} : memref<8x128xf32, #tpu.memory_space<vmem>>, vector<8x128xf32>,
    return
  }
  func.func @transform_0(%arg0: i32) -> (i32, i32) {
    %c0_i32 = arith.constant 0 : i32
    %c0_i32_0 = arith.constant 0 : i32
    return %arg0, %c0_i32 : i32, i32
  }
  func.func @transform_1(%arg0: i32) -> (i32, i32) {
    %c0_i32 = arith.constant 0 : i32
    %c0_i32_0 = arith.constant 0 : i32
    %c0_i32_1 = arith.constant 0 : i32
    return %c0_i32, %c0_i32_0 : i32, i32
  }
  func.func @transform_2(%arg0: i32) -> (i32, i32) {
    %c0_i32 = arith.constant 0 : i32
    %c0_i32_0 = arith.constant 0 : i32
    return %arg0, %c0_i32 : i32, i32
  }
}

</mosaic_0001>

<bundles_post_ra>
// kernel: tpu_custom_call.1
= control target key start
LH: loop header
LB: loop body
LE: loop exit
PB: predicated region body
PF: predicated region fallthrough
CT: control target
= control target key end

     0   :  { %7 = vsyncpa [#allocation3], 0  ;;  %s244_s0 = inlined_call_operand.hbm [shape: f32[8,128], index: 0, kind: input, shape index: {}]   ;;  %s245_s1 = inlined_call_operand.hbm [shape: f32[128,128], index: 1, kind: input, shape index: {}]   ;;  %s246_s2 = inlined_call_operand.hbm [shape: f32[8,128], index: 2, kind: output, shape index: {}]  }
   0x1   :  { %8 = vsyncpa [#allocation6], 0 }
   0x2   :  { %9 = vsyncpa [#allocation4], 0  ;;  %s15_s11 = sshll.u32 %s244_s0, 4  ;;  %s213_s12 = smov [#allocation2]   ;;  %s16_s11 = int_to_ptr.hbm [resolvable:$true] %s15_s11 }
   0x3   :  { %s17_s13 = sshll.u32 %s213_s12, 4  ;;  %s25_s16 = sshll.u32 %s245_s1, 4  ;;  %s18_s13 = int_to_ptr.vmem [resolvable:$true] %s17_s13  ;;  %s26_s16 = int_to_ptr.hbm [resolvable:$true] %s25_s16 }
   0x4   :  { %20 = dma.hbm_to_vmem [thread:$0]  %s16_s11, 128, %s18_s13, [#allocation3]  }
   0x5   :  { %s214_s17 = smov [#allocation5]   ;;  %s215_s19 = smov 128  }
   0x6   :  { %s27_s18 = sshll.u32 %s214_s17, 4  ;;  %s216_s20 = smov 8   ;;  %s28_s18 = int_to_ptr.vmem [resolvable:$true] %s27_s18 }
   0x7   :  { %33 = dma.hbm_to_vmem [thread:$0]  %s26_s16, 2048, %s28_s18, [#allocation6], %s215_s19, %s215_s19, %s216_s20  }
   0x8   :  { %207 = dma.done.wait [#allocation3], 128  }
   0x9   :  { %208 = vsyncadd [#allocation3], 4294967168 }
   0xa   :  { %209 = dma.done.wait [#allocation6], 2048  }
   0xb   :  { %210 = vsyncadd [#allocation6], 4294965248  ;;  %v58_v0 = vld [vmem:[#allocation5 + $0x78] sm:$0xff]  ;;  %v57_v1 = vld [vmem:[#allocation5 + $0x70] sm:$0xff]  ;;  %v217_v17 = vmov 32   ;;  %v218_v29 = vmov 0  }
   0xc   :  { %59 = vmatpush.msra.mxu0 %v58_v0  ;;  %v56_v2 = vld [vmem:[#allocation5 + $0x68] sm:$0xff]  ;;  %v55_v3 = vld [vmem:[#allocation5 + $0x60] sm:$0xff]  ;;  %v54_v4 = vld [vmem:[#allocation5 + $0x58] sm:$0xff]  ;;  %132 = vset.pattern.permute.xlu0 %v217_v17  ;;  %s219_s0 = smov [#allocation7]   ;;  %s114_s23 = sshll.u32 %s246_s2, 4  ;;  %s115_s23 = int_to_ptr.hbm [resolvable:$true] %s114_s23 }
   0xd   :  { %v53_v5 = vld [vmem:[#allocation5 + $0x50] sm:$0xff]  ;;  %v52_v6 = vld [vmem:[#allocation5 + $0x48] sm:$0xff]  ;;  %v51_v7 = vld [vmem:[#allocation5 + $0x40] sm:$0xff]  ;;  %s112_s1 = sshll.u32 %s219_s0, 4  ;;  %s113_s1 = int_to_ptr.vmem [resolvable:$true] %s112_s1 }
   0xe   :  { %60 = vmatpush.msra.mxu0 %v57_v1  ;;  %v50_v8 = vld [vmem:[#allocation5 + $0x38] sm:$0xff]  ;;  %v49_v9 = vld [vmem:[#allocation5 + $0x30] sm:$0xff]  ;;  %v48_v10 = vld [vmem:[#allocation5 + $0x28] sm:$0xff] }
   0xf   :  { %v47_v11 = vld [vmem:[#allocation5 + $0x20] sm:$0xff]  ;;  %v46_v12 = vld [vmem:[#allocation5 + $0x18] sm:$0xff]  ;;  %v45_v13 = vld [vmem:[#allocation5 + $0x10] sm:$0xff] }
  0x10   :  { %61 = vmatpush.msra.mxu0 %v56_v2  ;;  %v44_v14 = vld [vmem:[#allocation5 + $0x8] sm:$0xff]  ;;  %v43_v15 = vld [vmem:[#allocation5] sm:$0xff]  ;;  %v42_v16 = vld [vmem:[#allocation2] sm:$0xff] }
  0x12   :  { %62 = vmatpush.msra.mxu0 %v55_v3 }
  0x14   :  { %63 = vmatpush.msra.mxu0 %v54_v4 }
  0x16   :  { %64 = vmatpush.msra.mxu0 %v53_v5 }
  0x18   :  { %65 = vmatpush.msra.mxu0 %v52_v6 }
  0x1a   :  { %66 = vmatpush.msra.mxu0 %v51_v7 }
  0x1c   :  { %67 = vmatpush.msra.mxu0 %v50_v8 }
  0x1e   :  { %68 = vmatpush.msra.mxu0 %v49_v9 }
  0x20   :  { %69 = vmatpush.msra.mxu0 %v48_v10 }
  0x22   :  { %70 = vmatpush.msra.mxu0 %v47_v11 }
  0x24   :  { %71 = vmatpush.msra.mxu0 %v46_v12 }
  0x26   :  { %72 = vmatpush.msra.mxu0 %v45_v13 }
  0x28   :  { %73 = vmatpush.msra.mxu0 %v44_v14 }
  0x2a   :  { %74 = vmatpush.msra.mxu0 %v43_v15 }
  0x2b   :  { %75 = vmatmul.f32.vlgmr.msra.gmra.mxu0 %v42_v16 }
  0xa8   :  { %v76_v18 = vpop.f32.mrf.mxu0 }
  0xa9   :  { %133 = vrcp.f32 %v76_v18  ;;  %v90_v22 = vand.u32 2147483648, %v76_v18  ;;  %v88_v24 = vand.u32 2147483647, %v76_v18  ;;  %vm84_vm1 = vweird.f32 %v76_v18 }
  0xaa   :  { %vm99_vm4 = vcmp.gt.f32.partialorder %v76_v18, 0.0 }
  0xab   :  { %v91_v26 = vor.u32 1.1754944e-38, %v90_v22  ;;  %vm89_vm3 = vcmp.eq.f32.partialorder %v88_v24, 8.507059e+37  ;;  %v100_v30 = vsel %vm99_vm4, 1, %v218_v29 }
  0xaf   :  { %v134_v19 = vpop.eup %133 }
  0xb0   :  { %v80_v20 = vmul.f32 %v134_v19, %v76_v18  ;;  %vm85_vm0 = vweird.f32 %v134_v19 }
  0xb1   :  { %vm86_vm2 = vmor %vm84_vm1, %vm85_vm0 }
  0xb2   :  { %v81_v21 = vsub.f32 1.0, %v80_v20 }
  0xb4   :  { %v82_v23 = vmul.f32 %v134_v19, %v81_v21 }
  0xb6   :  { %v83_v25 = vadd.f32 %v134_v19, %v82_v23 }
  0xb8   :  { %v87_v27 = vsel %vm86_vm2, %v134_v19, %v83_v25 }
  0xb9   :  { %v92_v28 = vsel %vm89_vm3, %v91_v26, %v87_v27 }
  0xba   :  { %95 = vperm.xlu0 %132, %v92_v28  }
  0xc2   :  { %102 = vperm.xlu0 %132, %v100_v30  }
 0x12c   :  { %v96_v31 = vpop.permute.xlu0 %95 }
 0x12d   :  { %v98_v32 = vmul.f32 %v96_v31, %v76_v18 }
 0x134   :  { %v103_v33 = vpop.permute.xlu0 %102 }
 0x135   :  { %vm104_vm5 = vcmp.eq.s32.totalorder %v103_v33, 1 }
 0x136   :  { %v105_v34 = vsel %vm104_vm5, %v98_v32, nan }
 0x137   :  { %106 = vst [vmem:[#allocation7] sm:$0xff] %v105_v34 }
 0x138   :  { %117 = dma.vmem_to_hbm [thread:$0]  %s113_s1, 128, %s115_s23, [#allocation4]  }
 0x139   :  { %211 = dma.done.wait [#allocation4], 128  }
 0x13a   :  { %212 = vsyncadd [#allocation4], 4294967168 }
 0x13b   :  { %122 = vsyncpa [#allocation3], 1 }
 0x13c   :  { %123 = vsyncpa [#allocation6], 1 }
 0x13d   :  { %124 = vsyncpa [#allocation4], 1 }

// kernel: tpu_custom_call.1
= control target key start
LH: loop header
LB: loop body
LE: loop exit
PB: predicated region body
PF: predicated region fallthrough
CT: control target
= control target key end

     0   :  { %7 = vsyncpa [#allocation3], 0  ;;  %s244_s0 = inlined_call_operand.hbm [shape: f32[8,128], index: 0, kind: input, shape index: {}]   ;;  %s245_s1 = inlined_call_operand.hbm [shape: f32[128,128], index: 1, kind: input, shape index: {}]   ;;  %s246_s2 = inlined_call_operand.hbm [shape: f32[8,128], index: 2, kind: output, shape index: {}]  }
   0x1   :  { %8 = vsyncpa [#allocation6], 0 }
   0x2   :  { %9 = vsyncpa [#allocation4], 0  ;;  %s15_s11 = sshll.u32 %s244_s0, 4  ;;  %s213_s12 = smov [#allocation2]   ;;  %s16_s11 = int_to_ptr.hbm [resolvable:$true] %s15_s11 }
   0x3   :  { %s17_s13 = sshll.u32 %s213_s12, 4  ;;  %s25_s16 = sshll.u32 %s245_s1, 4  ;;  %s18_s13 = int_to_ptr.vmem [resolvable:$true] %s17_s13  ;;  %s26_s16 = int_to_ptr.hbm [resolvable:$true] %s25_s16 }
   0x4   :  { %20 = dma.hbm_to_vmem [thread:$0]  %s16_s11, 128, %s18_s13, [#allocation3]  }
   0x5   :  { %s214_s17 = smov [#allocation5]   ;;  %s215_s19 = smov 128  }
   0x6   :  { %s27_s18 = sshll.u32 %s214_s17, 4  ;;  %s216_s20 = smov 8   ;;  %s28_s18 = int_to_ptr.vmem [resolvable:$true] %s27_s18 }
   0x7   :  { %33 = dma.hbm_to_vmem [thread:$0]  %s26_s16, 2048, %s28_s18, [#allocation6], %s215_s19, %s215_s19, %s216_s20  }
   0x8   :  { %207 = dma.done.wait [#allocation3], 128  }
   0x9   :  { %208 = vsyncadd [#allocation3], 4294967168 }
   0xa   :  { %209 = dma.done.wait [#allocation6], 2048  }
   0xb   :  { %210 = vsyncadd [#allocation6], 4294965248  ;;  %v58_v0 = vld [vmem:[#allocation5 + $0x78] sm:$0xff]  ;;  %v57_v1 = vld [vmem:[#allocation5 + $0x70] sm:$0xff]  ;;  %v217_v17 = vmov 32   ;;  %v218_v29 = vmov 0  }
   0xc   :  { %59 = vmatpush.msra.mxu0 %v58_v0  ;;  %v56_v2 = vld [vmem:[#allocation5 + $0x68] sm:$0xff]  ;;  %v55_v3 = vld [vmem:[#allocation5 + $0x60] sm:$0xff]  ;;  %v54_v4 = vld [vmem:[#allocation5 + $0x58] sm:$0xff]  ;;  %132 = vset.pattern.permute.xlu0 %v217_v17  ;;  %s219_s0 = smov [#allocation7]   ;;  %s114_s23 = sshll.u32 %s246_s2, 4  ;;  %s115_s23 = int_to_ptr.hbm [resolvable:$true] %s114_s23 }
   0xd   :  { %v53_v5 = vld [vmem:[#allocation5 + $0x50] sm:$0xff]  ;;  %v52_v6 = vld [vmem:[#allocation5 + $0x48] sm:$0xff]  ;;  %v51_v7 = vld [vmem:[#allocation5 + $0x40] sm:$0xff]  ;;  %s112_s1 = sshll.u32 %s219_s0, 4  ;;  %s113_s1 = int_to_ptr.vmem [resolvable:$true] %s112_s1 }
   0xe   :  { %60 = vmatpush.msra.mxu0 %v57_v1  ;;  %v50_v8 = vld [vmem:[#allocation5 + $0x38] sm:$0xff]  ;;  %v49_v9 = vld [vmem:[#allocation5 + $0x30] sm:$0xff]  ;;  %v48_v10 = vld [vmem:[#allocation5 + $0x28] sm:$0xff] }
   0xf   :  { %v47_v11 = vld [vmem:[#allocation5 + $0x20] sm:$0xff]  ;;  %v46_v12 = vld [vmem:[#allocation5 + $0x18] sm:$0xff]  ;;  %v45_v13 = vld [vmem:[#allocation5 + $0x10] sm:$0xff] }
  0x10   :  { %61 = vmatpush.msra.mxu0 %v56_v2  ;;  %v44_v14 = vld [vmem:[#allocation5 + $0x8] sm:$0xff]  ;;  %v43_v15 = vld [vmem:[#allocation5] sm:$0xff]  ;;  %v42_v16 = vld [vmem:[#allocation2] sm:$0xff] }
  0x12   :  { %62 = vmatpush.msra.mxu0 %v55_v3 }
  0x14   :  { %63 = vmatpush.msra.mxu0 %v54_v4 }
  0x16   :  { %64 = vmatpush.msra.mxu0 %v53_v5 }
  0x18   :  { %65 = vmatpush.msra.mxu0 %v52_v6 }
  0x1a   :  { %66 = vmatpush.msra.mxu0 %v51_v7 }
  0x1c   :  { %67 = vmatpush.msra.mxu0 %v50_v8 }
  0x1e   :  { %68 = vmatpush.msra.mxu0 %v49_v9 }
  0x20   :  { %69 = vmatpush.msra.mxu0 %v48_v10 }
  0x22   :  { %70 = vmatpush.msra.mxu0 %v47_v11 }
  0x24   :  { %71 = vmatpush.msra.mxu0 %v46_v12 }
  0x26   :  { %72 = vmatpush.msra.mxu0 %v45_v13 }
  0x28   :  { %73 = vmatpush.msra.mxu0 %v44_v14 }
  0x2a   :  { %74 = vmatpush.msra.mxu0 %v43_v15 }
  0x2b   :  { %75 = vmatmul.f32.vlgmr.msra.gmra.mxu0 %v42_v16 }
  0xa8   :  { %v76_v18 = vpop.f32.mrf.mxu0 }
  0xa9   :  { %133 = vrcp.f32 %v76_v18  ;;  %v90_v22 = vand.u32 2147483648, %v76_v18  ;;  %v88_v24 = vand.u32 2147483647, %v76_v18  ;;  %vm84_vm1 = vweird.f32 %v76_v18 }
  0xaa   :  { %vm99_vm4 = vcmp.gt.f32.partialorder %v76_v18, 0.0 }
  0xab   :  { %v91_v26 = vor.u32 1.1754944e-38, %v90_v22  ;;  %vm89_vm3 = vcmp.eq.f32.partialorder %v88_v24, 8.507059e+37  ;;  %v100_v30 = vsel %vm99_vm4, 1, %v218_v29 }
  0xaf   :  { %v134_v19 = vpop.eup %133 }
  0xb0   :  { %v80_v20 = vmul.f32 %v134_v19, %v76_v18  ;;  %vm85_vm0 = vweird.f32 %v134_v19 }
  0xb1   :  { %vm86_vm2 = vmor %vm84_vm1, %vm85_vm0 }
  0xb2   :  { %v81_v21 = vsub.f32 1.0, %v80_v20 }
  0xb4   :  { %v82_v23 = vmul.f32 %v134_v19, %v81_v21 }
  0xb6   :  { %v83_v25 = vadd.f32 %v134_v19, %v82_v23 }
  0xb8   :  { %v87_v27 = vsel %vm86_vm2, %v134_v19, %v83_v25 }
  0xb9   :  { %v92_v28 = vsel %vm89_vm3, %v91_v26, %v87_v27 }
  0xba   :  { %95 = vperm.xlu0 %132, %v92_v28  }
  0xc2   :  { %102 = vperm.xlu0 %132, %v100_v30  }
 0x12c   :  { %v96_v31 = vpop.permute.xlu0 %95 }
 0x12d   :  { %v98_v32 = vmul.f32 %v96_v31, %v76_v18 }
 0x134   :  { %v103_v33 = vpop.permute.xlu0 %102 }
 0x135   :  { %vm104_vm5 = vcmp.eq.s32.totalorder %v103_v33, 1 }
 0x136   :  { %v105_v34 = vsel %vm104_vm5, %v98_v32, nan }
 0x137   :  { %106 = vst [vmem:[#allocation7] sm:$0xff] %v105_v34 }
 0x138   :  { %117 = dma.vmem_to_hbm [thread:$0]  %s113_s1, 128, %s115_s23, [#allocation4]  }
 0x139   :  { %211 = dma.done.wait [#allocation4], 128  }
 0x13a   :  { %212 = vsyncadd [#allocation4], 4294967168 }
 0x13b   :  { %122 = vsyncpa [#allocation3], 1 }
 0x13c   :  { %123 = vsyncpa [#allocation6], 1 }
 0x13d   :  { %124 = vsyncpa [#allocation4], 1 }

</bundles_post_ra>
